<compile_context>
chip_gen: v7x
topology: tpu7x:2x2x1
jax: 0.10.0
libtpu: 0.0.40
codegen_flags: <defaults>
</compile_context>

<pallas_src>
import functools
import math

import jax
import jax.numpy as jnp
import numpy as np
from jax.experimental import pallas as pl
from jax.experimental.pallas import tpu as pltpu


# ---------------------------------------------------------------------------
# Kernels
# ---------------------------------------------------------------------------
def _smooth_l1(diff, beta):
    n = jnp.abs(diff)
    if beta < 1e-5:
        return n
    half_over_beta = 0.5 / beta          # Python constant, no vector divide
    return jnp.where(n < beta, (half_over_beta * n) * n, n - 0.5 * beta)


def _wsl1_kernel_weighted(inp_ref, tgt_ref, cw_ref, w_ref, e_ref, out_ref,
                          *, beta: float):
    """One (TR, W) lane-dense tile of the loss, with per-anchor weights."""
    x = inp_ref[0]                                    # (TR, W)
    t = tgt_ref[0]                                    # (TR, W)
    t = jnp.where(jnp.isnan(t), x, t)                 # NaN targets -> diff 0
    diff = (x - t) * cw_ref[0]                        # (1, W) code-weight row
    loss = _smooth_l1(diff, beta)

    # Expand per-anchor weights (TR, TA) -> per-element (TR, W = TA*C) on the
    # idle MXU via a constant 0/1 expansion matrix E[a, a*C + c] = 1.
    # Exact three-way bf16 split: w = hi + mid + lo with each part exactly
    # representable in bf16, so each dot is an exact selection and the f32
    # sum reconstructs the f32 weight bit-exactly.
    w = w_ref[0]                                      # (TR, TA) f32
    w_hi = w.astype(jnp.bfloat16)
    r1 = w - w_hi.astype(jnp.float32)
    w_mid = r1.astype(jnp.bfloat16)
    w_lo = (r1 - w_mid.astype(jnp.float32)).astype(jnp.bfloat16)
    e = e_ref[...]                                    # (TA, W) bf16, resident
    w_exp = (jnp.dot(w_hi, e, preferred_element_type=jnp.float32)
             + (jnp.dot(w_mid, e, preferred_element_type=jnp.float32)
                + jnp.dot(w_lo, e, preferred_element_type=jnp.float32)))

    out_ref[0] = (loss * w_exp).astype(out_ref.dtype)


def _wsl1_kernel_unweighted(inp_ref, tgt_ref, cw_ref, out_ref, *, beta: float):
    """One (TR, W) lane-dense tile of the loss, weights=None fast path."""
    x = inp_ref[0]
    t = tgt_ref[0]
    t = jnp.where(jnp.isnan(t), x, t)
    diff = (x - t) * cw_ref[0]
    out_ref[0] = _smooth_l1(diff, beta).astype(out_ref.dtype)


# ---------------------------------------------------------------------------
# Layout selection
# ---------------------------------------------------------------------------
def _choose_layout(A, C, max_lanes=1024, max_rows=512):
    """Pick a lane-dense (rows x W-lane) tiling of the flattened A*C axis.

    Returns (W, TR, n_tiles).  The padded row count is R = TR * n_tiles and
    the padded element count per batch is R * W (>= A*C).  W is always a
    multiple of lcm(C, 128); every tile is full (no ragged last block).
    """
    N = A * C
    lane_unit = (C * 128) // math.gcd(C, 128)         # lcm(C, 128)

    # Preferred: largest multiple of lane_unit that divides N and is <= max_lanes.
    W = 0
    k = 1
    while k * lane_unit <= min(N, max_lanes):
        if N % (k * lane_unit) == 0:
            W = k * lane_unit
        k += 1
    if W == 0:
        # Awkward N: fixed lane-dense width; the wrapper pads N up to R*W.
        W = lane_unit * max(1, max_lanes // lane_unit)

    n_rows = -(-N // W)                               # ceil(N / W)
    if n_rows <= max_rows:
        return W, n_rows, 1                           # single full tile per batch

    # Prefer a divisor of n_rows (no row padding) that is a multiple of 8 and
    # not too small; otherwise tile at max_rows and pad the row count.
    best = 0
    for d in range(max_rows, 7, -1):
        if d % 8 == 0 and n_rows % d == 0:
            best = d
            break
    if best >= max_rows // 2:
        return W, best, n_rows // best
    TR = max_rows - (max_rows % 8) if max_rows % 8 else max_rows
    return W, TR, -(-n_rows // TR)


# ---------------------------------------------------------------------------
# Public wrapper
# ---------------------------------------------------------------------------
def weighted_smooth_l1_loss(inp, target, weights=None, code_weights=None,
                            beta: float = 1.0 / 9.0,
                            *, max_lanes: int = 1024, max_rows: int = 512):
    """JAX/Pallas equivalent of WeightedSmoothL1Loss.forward.

    Args:
        inp:     (B, A, C) float - encoded predictions.
        target:  (B, A, C) float - regression targets (may contain NaN).
        weights: (B, A) float or None - per-anchor weights.
        code_weights: (C,) float sequence or None - per-code weights.
        beta: smooth-L1 transition point.
    Returns:
        loss: (B, A, C) float32, no reduction (matches the PyTorch module).
    """
    B, A, C = inp.shape
    N = A * C
    inp = inp.astype(jnp.float32)
    target = target.astype(jnp.float32)
    if weights is not None:
        assert weights.shape == (B, A)
        weights = weights.astype(jnp.float32)

    W, TR, n_tiles = _choose_layout(A, C, max_lanes, max_rows)
    R = TR * n_tiles
    N_pad = R * W
    TA = W // C                                        # anchors per lane row

    if N_pad != N:
        # Zero-pad the anchor axis on the host: padded rows yield loss 0 and
        # are sliced off below, so every tile stays full / unmasked.
        A_pad = N_pad // C
        pad = A_pad - A
        inp = jnp.pad(inp, ((0, 0), (0, pad), (0, 0)))
        target = jnp.pad(target, ((0, 0), (0, pad), (0, 0)))
        if weights is not None:
            weights = jnp.pad(weights, ((0, 0), (0, pad)))

    # Free, contiguous reshapes into the lane-dense (B, R, W) view.
    inp3 = inp.reshape(B, R, W)
    tgt3 = target.reshape(B, R, W)

    # One resident lane-row of the repeating per-code weight pattern.
    if code_weights is None:
        cw_row = np.ones((W,), np.float32)
    else:
        cw_row = np.tile(np.asarray(code_weights, np.float32).reshape(C), W // C)
    cw_row = jnp.asarray(cw_row.reshape(1, 1, W))

    data_specs = [
        pl.BlockSpec((1, TR, W), lambda b, r: (b, r, 0)),   # input tile
        pl.BlockSpec((1, TR, W), lambda b, r: (b, r, 0)),   # target tile
        pl.BlockSpec((1, 1, W), lambda b, r: (0, 0, 0)),    # code weights (resident)
    ]

    if weights is not None:
        w3 = weights.reshape(B, R, TA)
        # Constant 0/1 expansion matrix E[a, a*C + c] = 1, shipped as bf16
        # (exact for a 0/1 matrix, half the resident VMEM).
        expand = jnp.asarray(
            np.kron(np.eye(TA, dtype=np.float32), np.ones((1, C), np.float32)),
            dtype=jnp.bfloat16)
        kernel = functools.partial(_wsl1_kernel_weighted, beta=float(beta))
        in_specs = data_specs + [
            pl.BlockSpec((1, TR, TA), lambda b, r: (b, r, 0)),  # anchor weights
            pl.BlockSpec((TA, W), lambda b, r: (0, 0)),         # expansion mat
        ]
        operands = (inp3, tgt3, cw_row, w3, expand)
        extra_bytes = 2 * TR * TA * 4 + 2 * TA * W * 2
    else:
        # Specialized variant: no dead ones-array traffic, no expansion dots.
        kernel = functools.partial(_wsl1_kernel_unweighted, beta=float(beta))
        in_specs = data_specs
        operands = (inp3, tgt3, cw_row)
        extra_bytes = 0

    # Explicit VMEM budget matching the actual double-buffered footprint.
    tile_bytes = TR * W * 4
    footprint = 3 * 2 * tile_bytes + 2 * W * 4 + extra_bytes
    vmem_limit = int(min(max(footprint + (4 << 20), 16 << 20), 48 << 20))

    # TODO(synk): on v7x with a tiny grid (B * n_tiles odd/small) one core may
    # idle; a finer row split would rebalance, not needed at realistic sizes.
    out3 = pl.pallas_call(
        kernel,
        out_shape=jax.ShapeDtypeStruct((B, R, W), jnp.float32),
        grid_spec=pltpu.PrefetchScalarGridSpec(
            num_scalar_prefetch=0,
            grid=(B, n_tiles),
            in_specs=in_specs,
            out_specs=pl.BlockSpec((1, TR, W), lambda b, r: (b, r, 0)),
        ),
        compiler_params=pltpu.CompilerParams(
            dimension_semantics=("parallel", "parallel"),
            vmem_limit_bytes=vmem_limit),
    )(*operands)

    out = out3.reshape(B, N_pad)
    if N_pad != N:
        out = out[:, :N]
    return out.reshape(B, A, C)


# ---------------------------------------------------------------------------
# Pure-JAX reference (mirrors the PyTorch module)
# ---------------------------------------------------------------------------
def _reference(inp, target, weights, code_weights, beta):
    inp = inp.astype(jnp.float32)
    target = target.astype(jnp.float32)
    t = jnp.where(jnp.isnan(target), inp, target)
    diff = inp - t
    if code_weights is not None:
        diff = diff * jnp.asarray(code_weights, jnp.float32).reshape(1, 1, -1)
    n = jnp.abs(diff)
    if beta < 1e-5:
        loss = n
    else:
        loss = jnp.where(n < beta, 0.5 * n * n / beta, n - 0.5 * beta)
    if weights is not None:
        loss = loss * weights.astype(jnp.float32)[..., None]
    return loss


if __name__ == "__main__":
    beta = 1.0 / 9.0
    key = jax.random.PRNGKey(0)

    def make_case(key, B, A, C, with_weights):
        k1, k2, k3 = jax.random.split(key, 3)
        inp = jax.random.normal(k1, (B, A, C), jnp.float32)
        target = jax.random.normal(k2, (B, A, C), jnp.float32)
        # Inject NaNs into target to exercise the isnan path.
        target = target.at[0, 0, 0].set(jnp.nan)
        target = target.at[B - 1, A // 2, C - 1].set(jnp.nan)
        weights = (jax.random.uniform(k3, (B, A), jnp.float32)
                   if with_weights else None)
        code_weights = np.linspace(0.5, 1.5, C).astype(np.float32)
        return inp, target, weights, code_weights

    cases = [
        # (B, A, C, with_weights, extra kwargs)  -- kept small/deterministic
        dict(B=2, A=64, C=8, with_weights=True, kwargs={}),          # nice shape
        dict(B=2, A=37, C=7, with_weights=True, kwargs={}),          # padded lanes
        dict(B=2, A=2048, C=8, with_weights=False,                   # weights=None,
             kwargs={"max_rows": 8}),                                # multi row-tile
        dict(B=2, A=2304, C=8, with_weights=True,                    # row padding +
             kwargs={"max_rows": 8}),                                # slice back
    ]

    keys = jax.random.split(key, len(cases))
    for k, case in zip(keys, cases):
        inp, target, weights, code_weights = make_case(
            k, case["B"], case["A"], case["C"], case["with_weights"])
        loss = weighted_smooth_l1_loss(inp, target, weights, code_weights,
                                       beta, **case["kwargs"])
        loss = jax.block_until_ready(loss)
        ref = _reference(inp, target, weights, code_weights, beta)
        np.testing.assert_allclose(np.asarray(loss), np.asarray(ref),
                                   rtol=1e-5, atol=1e-6)

    print("KERNEL_OK")
</pallas_src>

<mosaic_0001>
module attributes {stable_mosaic.version = 11 : i64} {
  func.func @_wsl1_kernel_weighted(%arg0: i32, %arg1: i32, %arg2: memref<1x1x512xf32, #tpu.memory_space<vmem>>, %arg3: memref<1x1x512xf32, #tpu.memory_space<vmem>>, %arg4: memref<1x1x512xf32, #tpu.memory_space<vmem>>, %arg5: memref<1x1x64xf32, #tpu.memory_space<vmem>>, %arg6: memref<64x512xbf16, #tpu.memory_space<vmem>>, %arg7: memref<1x1x512xf32, #tpu.memory_space<vmem>>) attributes {dimension_semantics = [#tpu.dimension_semantics<parallel>, #tpu.dimension_semantics<parallel>], iteration_bounds = array<i64: 2, 1>, scalar_prefetch = 0 : i64, scratch_operands = 0 : i64, tpu.core_type = #tpu.core_type<tc>, window_params = [{transform_indices = @transform_0, window_bounds = array<i64: 1, 1, 512>}, {transform_indices = @transform_1, window_bounds = array<i64: 1, 1, 512>}, {pipeline_mode = #tpu.pipeline_mode<synchronous>, transform_indices = @transform_2, window_bounds = array<i64: 1, 1, 512>}, {transform_indices = @transform_3, window_bounds = array<i64: 1, 1, 64>}, {pipeline_mode = #tpu.pipeline_mode<synchronous>, transform_indices = @transform_4, window_bounds = array<i64: 64, 512>}, {transform_indices = @transform_5, window_bounds = array<i64: 1, 1, 512>}]} {
    %c0 = arith.constant 0 : index
    %c0_0 = arith.constant 0 : index
    %c0_1 = arith.constant 0 : index
    %0 = vector.load %arg2[%c0, %c0_0, %c0_1] : memref<1x1x512xf32, #tpu.memory_space<vmem>>, vector<1x1x512xf32>
    %1 = vector.shape_cast %0 : vector<1x1x512xf32> to vector<1x512xf32>
    %c0_2 = arith.constant 0 : index
    %c0_3 = arith.constant 0 : index
    %c0_4 = arith.constant 0 : index
    %2 = vector.load %arg3[%c0_2, %c0_3, %c0_4] : memref<1x1x512xf32, #tpu.memory_space<vmem>>, vector<1x1x512xf32>
    %3 = vector.shape_cast %2 : vector<1x1x512xf32> to vector<1x512xf32>
    %4 = arith.cmpf one, %3, %3 : vector<1x512xf32>
    %5 = arith.select %4, %1, %3 : vector<1x512xi1>, vector<1x512xf32>
    %6 = arith.subf %1, %5 : vector<1x512xf32>
    %c0_5 = arith.constant 0 : index
    %c0_6 = arith.constant 0 : index
    %c0_7 = arith.constant 0 : index
    %7 = vector.load %arg4[%c0_5, %c0_6, %c0_7] : memref<1x1x512xf32, #tpu.memory_space<vmem>>, vector<1x1x512xf32>
    %8 = vector.shape_cast %7 : vector<1x1x512xf32> to vector<1x512xf32>
    %9 = arith.mulf %6, %8 : vector<1x512xf32>
    %10 = math.absf %9 : vector<1x512xf32>
    %cst = arith.constant 0.111111112 : f32
    %11 = vector.broadcast %cst : f32 to vector<1x512xf32>
    %12 = arith.cmpf olt, %10, %11 : vector<1x512xf32>
    %cst_8 = arith.constant 4.500000e+00 : f32
    %13 = vector.broadcast %cst_8 : f32 to vector<1x512xf32>
    %14 = arith.mulf %13, %10 : vector<1x512xf32>
    %15 = arith.mulf %14, %10 : vector<1x512xf32>
    %cst_9 = arith.constant 0.055555556 : f32
    %16 = vector.broadcast %cst_9 : f32 to vector<1x512xf32>
    %17 = arith.subf %10, %16 : vector<1x512xf32>
    %18 = arith.select %12, %15, %17 : vector<1x512xi1>, vector<1x512xf32>
    %c0_10 = arith.constant 0 : index
    %c0_11 = arith.constant 0 : index
    %c0_12 = arith.constant 0 : index
    %19 = vector.load %arg5[%c0_10, %c0_11, %c0_12] : memref<1x1x64xf32, #tpu.memory_space<vmem>>, vector<1x1x64xf32>
    %20 = vector.shape_cast %19 : vector<1x1x64xf32> to vector<1x64xf32>
    %21 = arith.truncf %20 : vector<1x64xf32> to vector<1x64xbf16>
    %22 = arith.extf %21 : vector<1x64xbf16> to vector<1x64xf32>
    %23 = arith.subf %20, %22 : vector<1x64xf32>
    %24 = arith.truncf %23 : vector<1x64xf32> to vector<1x64xbf16>
    %25 = arith.extf %24 : vector<1x64xbf16> to vector<1x64xf32>
    %26 = arith.subf %23, %25 : vector<1x64xf32>
    %27 = arith.truncf %26 : vector<1x64xf32> to vector<1x64xbf16>
    %c0_13 = arith.constant 0 : index
    %c0_14 = arith.constant 0 : index
    %28 = vector.load %arg6[%c0_13, %c0_14] : memref<64x512xbf16, #tpu.memory_space<vmem>>, vector<64x512xbf16>
    %cst_15 = arith.constant dense<0.000000e+00> : vector<1x512xf32>
    %29 = tpu.matmul %21, %28, %cst_15 {dimension_numbers = #tpu.dot_dimension_numbers<[1], [0], [0], [1], [0, 0, 1, 1], [], []>} : vector<1x64xbf16>, vector<64x512xbf16>, vector<1x512xf32> -> vector<1x512xf32>
    %cst_16 = arith.constant dense<0.000000e+00> : vector<1x512xf32>
    %30 = tpu.matmul %24, %28, %cst_16 {dimension_numbers = #tpu.dot_dimension_numbers<[1], [0], [0], [1], [0, 0, 1, 1], [], []>} : vector<1x64xbf16>, vector<64x512xbf16>, vector<1x512xf32> -> vector<1x512xf32>
    %cst_17 = arith.constant dense<0.000000e+00> : vector<1x512xf32>
    %31 = tpu.matmul %27, %28, %cst_17 {dimension_numbers = #tpu.dot_dimension_numbers<[1], [0], [0], [1], [0, 0, 1, 1], [], []>} : vector<1x64xbf16>, vector<64x512xbf16>, vector<1x512xf32> -> vector<1x512xf32>
    %32 = arith.addf %30, %31 : vector<1x512xf32>
    %33 = arith.addf %29, %32 : vector<1x512xf32>
    %34 = arith.mulf %18, %33 : vector<1x512xf32>
    %c0_18 = arith.constant 0 : index
    %c0_19 = arith.constant 0 : index
    %c0_20 = arith.constant 0 : index
    %35 = vector.load %arg7[%c0_18, %c0_19, %c0_20] : memref<1x1x512xf32, #tpu.memory_space<vmem>>, vector<1x1x512xf32>
    %36 = vector.shape_cast %35 : vector<1x1x512xf32> to vector<1x512xf32>
    %37 = vector.shape_cast %34 : vector<1x512xf32> to vector<1x1x512xf32>
    tpu.vector_store %arg7[%c0_18, %c0_19, %c0_20], %37 {strides = array<i32>} : memref<1x1x512xf32, #tpu.memory_space<vmem>>, vector<1x1x512xf32>,
    return
  }
  func.func @transform_0(%arg0: i32, %arg1: i32) -> (i32, i32, i32) {
    %c0_i32 = arith.constant 0 : i32
    %c0_i32_0 = arith.constant 0 : i32
    return %arg0, %arg1, %c0_i32 : i32, i32, i32
  }
  func.func @transform_1(%arg0: i32, %arg1: i32) -> (i32, i32, i32) {
    %c0_i32 = arith.constant 0 : i32
    %c0_i32_0 = arith.constant 0 : i32
    return %arg0, %arg1, %c0_i32 : i32, i32, i32
  }
  func.func @transform_2(%arg0: i32, %arg1: i32) -> (i32, i32, i32) {
    %c0_i32 = arith.constant 0 : i32
    %c0_i32_0 = arith.constant 0 : i32
    %c0_i32_1 = arith.constant 0 : i32
    %c0_i32_2 = arith.constant 0 : i32
    return %c0_i32, %c0_i32_0, %c0_i32_1 : i32, i32, i32
  }
  func.func @transform_3(%arg0: i32, %arg1: i32) -> (i32, i32, i32) {
    %c0_i32 = arith.constant 0 : i32
    %c0_i32_0 = arith.constant 0 : i32
    return %arg0, %arg1, %c0_i32 : i32, i32, i32
  }
  func.func @transform_4(%arg0: i32, %arg1: i32) -> (i32, i32) {
    %c0_i32 = arith.constant 0 : i32
    %c0_i32_0 = arith.constant 0 : i32
    %c0_i32_1 = arith.constant 0 : i32
    return %c0_i32, %c0_i32_0 : i32, i32
  }
  func.func @transform_5(%arg0: i32, %arg1: i32) -> (i32, i32, i32) {
    %c0_i32 = arith.constant 0 : i32
    %c0_i32_0 = arith.constant 0 : i32
    return %arg0, %arg1, %c0_i32 : i32, i32, i32
  }
}

</mosaic_0001>

<bundles_post_ra>
// kernel: tpu_custom_call.1
= control target key start
LH: loop header
LB: loop body
LE: loop exit
PB: predicated region body
PF: predicated region fallthrough
CT: control target
= control target key end

     0   :  { %s1569_s0 = inlined_call_operand.hbm [shape: f32[2,1,512], index: 0, kind: input, shape index: {}]   ;;  %s1570_s1 = inlined_call_operand.hbm [shape: f32[2,1,512], index: 1, kind: input, shape index: {}]   ;;  %s1571_s2 = inlined_call_operand.vmem [shape: f32[1,1,512], index: 2, kind: input, shape index: {}]   ;;  %s1572_s3 = inlined_call_operand.vmem [shape: f32[2,1,64], index: 3, kind: input, shape index: {}]   ;;  %s1573_s4 = inlined_call_operand.hbm [shape: bf16[64,512], index: 4, kind: input, shape index: {}]   ;;  %s1574_s5 = inlined_call_operand.hbm [shape: f32[2,1,512], index: 5, kind: output, shape index: {}]  }
   0x1   :  { %1581 = sst [smem:[#allocation16_spill]] %s1573_s4 }
   0x2   :  { %10 = vsyncpa [#allocation3], 0 }
   0x3   :  { %12 = vsyncpa [#allocation3 + $0x1], 0 }
   0x4   :  { %13 = vsyncpa [#allocation6], 0 }
   0x5   :  { %15 = vsyncpa [#allocation6 + $0x1], 0 }
   0x6   :  { %16 = vsyncpa [#allocation4], 0 }
   0x7   :  { %18 = vsyncpa [#allocation4 + $0x1], 0  ;;  %s1284_s18 = smov 0   ;;  %s1286_s19 = smov 0  }
   0x8   :  { %s1288_s20 = smov 0   ;;  %s1290_s21 = smov 0  }
   0x9   :  { %s1292_s22 = smov 0   ;;  %s1294_s23 = smov 0  }
   0xa LB: > { %1582 = sst [smem:[#allocation13_spill]] %s1240_s22  ;;  %s1315_s24 = sadd.s32 4294967295, %s1244_s23   ;;  %s1244_s23 = sphi %s1294_s23, %s24_s23   ;;  %s1240_s22 = sphi %s1292_s22, %s1603_s22   ;;  %s1236_s21 = sphi %s1290_s21, %s1602_s21   ;;  %s1232_s20 = sphi %s1288_s20, %s1606_s20   ;;  %s1228_s19 = sphi %s1286_s19, %s1605_s19   ;;  %s1224_s18 = sphi %s1284_s18, %s1604_s18  }
   0xb   : > { %s898_s25 = sadd.s32 4294967294, %s1244_s23   ;;  %p58_p0 = scmp.ne.s32.totalorder %s1228_s19, %s1224_s18 }
   0xc   : > { %p1575_p1 = scmp.eq.s32.totalorder %s1315_s24, 0  ;;  %p188_p3 = scmp.eq.s32.totalorder %s898_s25, 1 }
   0xd   : > { %p899_p5 = scmp.ge.s32.totalorder %s1244_s23, 1  ;;  %p195_p7 = scmp.lt.s32.totalorder %s1244_s23, 3 }
   0xe   : > { %p1324_p4 = por %p1575_p1, %p58_p0  ;;  %p1329_p6 = por %p188_p3, %p58_p0 }
   0xf   : > { %p1334_p8 = pnand %p899_p5, %p195_p7  ;;  %s1246_s29 = smov [#allocation7]  }
  0x10   : > { %s1583_s26 = scalar_select %p1324_p4, 1, 0 }
  0x11   : > { %s1584_s27 = scalar_select %p1329_p6, 1, 0 }
  0x12   : > { %s1585_s28 = scalar_select %p1334_p8, 1, 0 }
  0x13   : > { %s210_s30 = sshll.u32 %s1246_s29, 4  ;;  %p970_p9 = pneg %p1334_p8  ;;  %s211_s30 = int_to_ptr.vmem [resolvable:$true] %s210_s30 }
  0x14   : > { %s36_s7 = sadd.s32 1, %s1240_s22  ;;  %s1587_s4 = sld [smem:[#allocation16_spill]] }
  0x15   : > { %p1343_p11 = pnand %p970_p9, %p1575_p1 }
  0x17   : > { %p1068_p13 = pneg %p1343_p11 }
  0x1a   : > { %s1066_s10 = scalar_lea.hbm %s1587_s4, 2048 }
  0x1b   : > { %p1067_p12 = scmp.ne.s32.totalorder %s1587_s4, %s1066_s10  ;;  %p1073_p5 = scmp.lt.u32.totalorder %s1066_s10, %s1587_s4 }
  0x1d   : > { %p1069_p0 = pnand %p1068_p13, %p1067_p12 }
  0x1f   : > { %p1070_p3 = pneg %p1069_p0 }
  0x21   : > { %p1075_p7 = pnand %p1073_p5, %p1070_p3 }
  0x23   : > { %1078 = shalt.err (!%p1075_p7)
}
  0x24   : > { %s1079_s15 = scalar_lea.vmem %s211_s30, 2048  ;;  %p1087_p2 = scmp.lt.s32.totalorder %s211_s30, %s211_s30 }
  0x25   : > { %p1080_p9 = scmp.ne.s32.totalorder %s211_s30, %s1079_s15  ;;  %p1088_p6 = scmp.lt.s32.totalorder %s1079_s15, %s1079_s15 }
  0x27   : > { %p1082_p10 = pnand %p1080_p9, %p1068_p13  ;;  %p1089_p4 = por %p1088_p6, %p1087_p2 }
  0x29   : > { %p1083_p1 = pneg %p1082_p10 }
  0x2b   : > { %p1090_p8 = pnand %p1089_p4, %p1083_p1 }
  0x2d   : > { %1093 = shalt.err (!%p1090_p8)
}
  0x2e   : > { %s1247_s16 = smov 256   ;;  %s1248_s17 = smov 16  }
  0x2f   : > { %973 = dma.hbm_to_vmem [thread:$0]  (!%p1343_p11), %s1587_s4, 2048, %s211_s30, [#allocation6], %s1247_s16, %s1247_s16, %s1248_s17  }
  0x30   : > { %p38_p1 = scmp.ge.s32.totalorder %s36_s7, 2  ;;  %s45_s8 = sadd.s32 1, %s1232_s20 }
  0x31   : > { %p52_p2 = scmp.ne.s32.totalorder %s1232_s20, %s1228_s19  ;;  %p53_p4 = scmp.eq.s32.totalorder %s1244_s23, 0 }
  0x32   : > { %s1608_s7 = smov (%p38_p1, %s36_s7), 0  ;;  %p1590_p8 = scmp.eq.s32.totalorder %s1315_s24, 1 }
  0x33   : > { %1588 = sst [smem:[#allocation14_spill]] %s1608_s7  ;;  %p1370_p6 = por %p53_p4, %p52_p2 }
  0x34   : > { %p1376_p10 = por %p1590_p8, %p52_p2  ;;  %s40_s10 = ssub.s32 %s1240_s22, %s1608_s7 }
  0x35   : > { %p986_p11 = scmp.lt.s32.totalorder %s1244_s23, 2  ;;  %p43_p12 = scmp.eq.s32.totalorder %s40_s10, 0 }
  0x36   : > { %s1591_s6 = scalar_select %p1376_p10, 1, 0 }
  0x37   : > { %s224_s30 = sand.u32 1, %s1232_s20   ;;  %s941_s13 = sshll.u32 %s1240_s22, 6 }
  0x38   : > { %s1384_s11 = sshll.u32 %s224_s30, 2  ;;  %s1393_s16 = scalar_lea.hbm %s1569_s0, %s941_s13 }
  0x39   : > { %s1387_s12 = scalar_select %p43_p12, %s1232_s20, %s45_s8  }
  0x3a   : > { %s228_s17 = scalar_lea.vmem [#allocation2], %s1384_s11  ;;  %p1400_p13 = pnand %p986_p11, %p1370_p6 }
  0x3b   : > { %1592 = sst [smem:[#allocation15_spill]] %s1387_s12  ;;  %s238_s25 = sshll.u32 %s228_s17, 4  ;;  %s1396_s25 = int_to_ptr.vmem [resolvable:$true] %s238_s25 }
  0x3c   : > { %s1407_s14 = scalar_lea.hbm %s1570_s1, %s941_s13  ;;  %s245_s15 = sand.u32 1, %s1244_s23  }
  0x3d   : > { %s225_s4 = scalar_lea.sflag [#allocation3], %s224_s30  ;;  %s1094_s7 = scalar_lea.hbm %s1393_s16, 64 }
  0x3e   : > { %p1095_p0 = scmp.ne.s32.totalorder %s1393_s16, %s1094_s7  ;;  %p1096_p3 = pneg %p1400_p13 }
  0x3f   : > { %s1099_s22 = scalar_lea.hbm %s1569_s0, 128  ;;  %p1100_p9 = scmp.lt.u32.totalorder %s1393_s16, %s1569_s0 }
  0x40   : > { %p1097_p5 = pnand %p1096_p3, %p1095_p0  ;;  %p1101_p1 = scmp.lt.u32.totalorder %s1099_s22, %s1094_s7 }
  0x41   : > { %p1103_p4 = scmp.lt.u32.totalorder %s1094_s7, %s1393_s16 }
  0x42   : > { %p1098_p7 = pneg %p1097_p5  ;;  %p1102_p2 = por %p1101_p1, %p1100_p9 }
  0x44   : > { %p1104_p6 = por %p1103_p4, %p1102_p2 }
  0x46   : > { %p1105_p8 = pnand %p1104_p6, %p1098_p7 }
  0x48   : > { %1108 = shalt.err (!%p1105_p8)
}
  0x49   : > { %s1109_s30 = scalar_lea.vmem %s1396_s25, 64  ;;  %s1249_s13 = smov [#allocation2]  }
  0x4a   : > { %p1110_p11 = scmp.ne.s32.totalorder %s1396_s25, %s1109_s30  ;;  %s1114_s10 = sshll.u32 %s1249_s13, 4  ;;  %s1115_s10 = int_to_ptr.vmem [resolvable:$false] %s1114_s10 }
  0x4b   : > { %s1116_s12 = scalar_lea.vmem %s1115_s10, 128  ;;  %p1117_p5 = scmp.lt.s32.totalorder %s1396_s25, %s1115_s10 }
  0x4c   : > { %p1112_p12 = pnand %p1110_p11, %p1096_p3  ;;  %p1118_p9 = scmp.lt.s32.totalorder %s1116_s12, %s1109_s30 }
  0x4e   : > { %p1113_p0 = pneg %p1112_p12  ;;  %p1119_p1 = por %p1118_p9, %p1117_p5 }
  0x50   : > { %p1120_p2 = pnand %p1119_p1, %p1113_p0 }
  0x52   : > { %1123 = shalt.err (!%p1120_p2)
}
  0x53   : > { %977 = dma.hbm_to_vmem [thread:$0]  (!%p1400_p13), %s1393_s16, 64, %s1396_s25, %s225_s4  }
  0x54   : > { %s249_s22 = scalar_lea.vmem [#allocation5], %s1384_s11  ;;  %s246_s9 = scalar_lea.sflag [#allocation6], %s245_s15 }
  0x55   : > { %s259_s7 = sshll.u32 %s249_s22, 4  ;;  %s1124_s17 = scalar_lea.hbm %s1407_s14, 64  ;;  %s260_s7 = int_to_ptr.vmem [resolvable:$true] %s259_s7 }
  0x56   : > { %p1125_p7 = scmp.ne.s32.totalorder %s1407_s14, %s1124_s17  ;;  %s1129_s13 = scalar_lea.hbm %s1570_s1, 128 }
  0x57   : > { %p1130_p8 = scmp.lt.u32.totalorder %s1407_s14, %s1570_s1  ;;  %p1131_p11 = scmp.lt.u32.totalorder %s1129_s13, %s1124_s17 }
  0x58   : > { %p1127_p4 = pnand %p1125_p7, %p1096_p3  ;;  %p1133_p0 = scmp.lt.u32.totalorder %s1124_s17, %s1407_s14 }
  0x59   : > { %p1132_p12 = por %p1131_p11, %p1130_p8 }
  0x5a   : > { %p1128_p6 = pneg %p1127_p4 }
  0x5b   : > { %p1134_p5 = por %p1133_p0, %p1132_p12 }
  0x5d   : > { %p1135_p9 = pnand %p1134_p5, %p1128_p6 }
  0x5f   : > { %1138 = shalt.err (!%p1135_p9)
}
  0x60   : > { %s1139_s4 = scalar_lea.vmem %s260_s7, 64  ;;  %s1250_s11 = smov [#allocation5]  }
  0x61   : > { %p1140_p1 = scmp.ne.s32.totalorder %s260_s7, %s1139_s4  ;;  %s1144_s16 = sshll.u32 %s1250_s11, 4  ;;  %s1145_s16 = int_to_ptr.vmem [resolvable:$false] %s1144_s16 }
  0x62   : > { %s1146_s25 = scalar_lea.vmem %s1145_s16, 128  ;;  %p1147_p4 = scmp.lt.s32.totalorder %s260_s7, %s1145_s16 }
  0x63   : > { %p1142_p2 = pnand %p1140_p1, %p1096_p3  ;;  %p1148_p10 = scmp.lt.s32.totalorder %s1146_s25, %s1139_s4 }
  0x65   : > { %p1143_p7 = pneg %p1142_p2  ;;  %p1149_p8 = por %p1148_p10, %p1147_p4 }
  0x67   : > { %p1150_p11 = pnand %p1149_p8, %p1143_p7 }
  0x69   : > { %1153 = shalt.err (!%p1150_p11)
}
  0x6a   : > { %980 = dma.hbm_to_vmem [thread:$0]  (!%p1400_p13), %s1407_s14, 64, %s260_s7, %s246_s9  }
  0x6b   : > { %p1594_p6 = scmp.ne.s32.totalorder %s1585_s28, 0 }
  0x6c   : > { %s1460_s15 = sand.u32 (!%p1594_p6), 1, %s1228_s19   ;;  %p1595_p10 = scmp.ne.s32.totalorder (!%p1594_p6), %s1583_s26, 0 }
  0x6d   : > { %277 = sbr.rel (%p1594_p6) target bundleno = 412 (0x19c), region = 40  ;;  %s1463_s22 = sshll.u32 (!%p1594_p6), %s1460_s15, 2 }
  0x6e   : > { %s280_s17 = scalar_lea.sflag (!%p1594_p6), [#allocation3], %s1460_s15  ;;  %s283_s8 = scalar_lea.vmem (!%p1594_p6), [#allocation2], %s1463_s22 }
  0x74   : > { %1207 = dma.done.wait (%p1595_p10), %s280_s17, 64  }
  0x75   : > { %1209 = vsyncadd (%p1595_p10), %s280_s17, 4294967232  ;;  %s288_s28 = sand.u32 1, %s1315_s24   ;;  %s292_s14 = scalar_lea.vmem [#allocation5], %s1463_s22 }
  0x76   : > { %s289_s29 = scalar_lea.sflag [#allocation6], %s288_s28 }
  0x77   : > { %1211 = dma.done.wait (%p1595_p10), %s289_s29, 64  }
  0x78   : > { %1213 = vsyncadd (%p1595_p10), %s289_s29, 4294967232  ;;  %p1596_p13 = scmp.eq.s32.totalorder %s1315_s24, 0 }
  0x7a   : > { %1215 = dma.done.wait (%p1596_p13), [#allocation6], 2048   ;;  %p1597_p3 = pmov %p1596_p13 }
  0x7b   : > { %v1251_v0 = vmov 0   ;;  %p334_p12 = scmp.lt.s32.totalorder %s1236_s21, 1  ;;  %v1042_v1 = vld [vmem:[#allocation7 + $0x4] ss:$16 sps:$4 sm:$0xff]   ;;  %v1044_v2 = vld [vmem:[#allocation7 + $0xc] ss:$16 sps:$4 sm:$0xff]   ;;  %v723_v33 = vlaneseq }
  0x7c   : > { %1217 = vsyncadd (%p1597_p3), [#allocation6], 4294965248  ;;  %494 = vmatprep.mubr.bf16.mxu0 %v1251_v0  ;;  %535 = vmatprep.mubr.bf16.mxu1 %v1251_v0  ;;  %v1484_v3 = vld [vmem:[#allocation7] ss:$16 sps:$4 sm:$0xff]   ;;  %v1486_v4 = vld [vmem:[#allocation7 + $0x8] ss:$16 sps:$4 sm:$0xff]  }
  0x7d   : > { %462 = vmatprep.subr.bf16.mxu0 %v1042_v1  ;;  %503 = vmatprep.subr.bf16.mxu1 %v1044_v2  ;;  %v1048_v5 = vld [vmem:[#allocation7 + $0x24] ss:$16 sps:$4 sm:$0xff]   ;;  %s335_s26 = scalar_select %p334_p12, %s1236_s21, 1  ;;  %v1050_v6 = vld [vmem:[#allocation7 + $0x2c] ss:$16 sps:$4 sm:$0xff]   ;;  %vm458_vm0 = vcmask 523264  }
  0x7e   : > { %463 = vmatpush1.bf16.msra.mxu0 %v1484_v3  ;;  %504 = vmatpush1.bf16.msra.mxu1 %v1486_v4  ;;  %v1052_v7 = vld [vmem:[#allocation7 + $0x20] ss:$16 sps:$4 sm:$0xff]   ;;  %v1053_v8 = vld [vmem:[#allocation7 + $0x28] ss:$16 sps:$4 sm:$0xff]   ;;  %v1054_v9 = vld [vmem:[#allocation7 + $0x44] ss:$16 sps:$4 sm:$0xff]  }
  0x7f   : > { %464 = vmatprep.subr.bf16.mxu0 %v1048_v5  ;;  %505 = vmatprep.subr.bf16.mxu1 %v1050_v6  ;;  %v1056_v10 = vld [vmem:[#allocation7 + $0x4c] ss:$16 sps:$4 sm:$0xff]   ;;  %v1058_v11 = vld [vmem:[#allocation7 + $0x40] ss:$16 sps:$4 sm:$0xff]   ;;  %v1059_v12 = vld [vmem:[#allocation7 + $0x48] ss:$16 sps:$4 sm:$0xff]   ;;  %s339_s9 = scalar_lea.vmem %s1572_s3, %s335_s26 }
  0x80   : > { %v1060_v13 = vld [vmem:[#allocation7 + $0x64] ss:$16 sps:$4 sm:$0xff]   ;;  %v1062_v14 = vld [vmem:[#allocation7 + $0x6c] ss:$16 sps:$4 sm:$0xff]   ;;  %v354_v15 = vld [vmem:[%s339_s9] sm:$0x1] }
  0x81   : > { %v355_v16 = vpack.c.bf16 %v354_v15, %v354_v15  ;;  %v1064_v17 = vld [vmem:[#allocation7 + $0x60] ss:$16 sps:$4 sm:$0xff]   ;;  %v1065_v18 = vld [vmem:[#allocation7 + $0x68] ss:$16 sps:$4 sm:$0xff]   ;;  %v1252_v31 = vmov 1966171168  }
  0x82   : > { %465 = vmatpush1.bf16.msra.mxu0 %v1052_v7  ;;  %506 = vmatpush1.bf16.msra.mxu1 %v1053_v8  ;;  %v342_v25 = vld [vmem:[%s292_s14] sm:$0xf]  ;;  %v341_v26 = vld [vmem:[%s283_s8] sm:$0xf]  ;;  %v721_v32 = vunpack.c.l.s4 %v1252_v31  ;;  %v724_v36 = vshrl.u32 %v723_v33, 7  ;;  %s943_s10 = sshll.u32 %s1236_s21, 6 }
  0x83   : > { %466 = vmatprep.subr.bf16.mxu0 %v1054_v9  ;;  %507 = vmatprep.subr.bf16.mxu1 %v1056_v10  ;;  %v356_v19 = vunpack.c.l.bf16 %v355_v16  ;;  %vm343_vm1 = vcmp.ne.f32.partialorder %v342_v25, %v342_v25  ;;  %v346_v29 = vld [vmem:[%s1571_s2] sm:$0xf]  ;;  %s333_s12 = scalar_lea.vmem [#allocation8], %s1463_s22  ;;  %vm746_vm3 = vcmp.lt.s32.totalorder %v723_v33, 512  ;;  %s1520_s25 = scalar_lea.hbm %s1574_s5, %s943_s10 }
  0x84   : > { %v344_v27 = vsel %vm343_vm1, %v341_v26, %v342_v25  ;;  %v722_v35 = vunpack.c.0.s8 %v721_v32  ;;  %s766_s4 = sshll.u32 %s333_s12, 4  ;;  %s750_s17 = scalar_lea.sflag [#allocation4], %s1460_s15  ;;  %s1522_s4 = int_to_ptr.vmem [resolvable:$true] %s766_s4 }
  0x85   : > { %v357_v20 = vsub.f32 %v354_v15, %v356_v19  ;;  %v345_v28 = vsub.f32 %v341_v26, %v344_v27  ;;  %s1154_s8 = scalar_lea.vmem %s1522_s4, 64  ;;  %p1598_p5 = scmp.ne.s32.totalorder %s1591_s6, 0 }
  0x86   : > { %467 = vmatpush1.bf16.msra.mxu0 %v1058_v11  ;;  %508 = vmatpush1.bf16.msra.mxu1 %v1059_v12  ;;  %v725_v40 = vsub.s32 %v722_v35, %v724_v36  ;;  %p1155_p0 = scmp.ne.s32.totalorder %s1522_s4, %s1154_s8  ;;  %s1253_s21 = smov [#allocation8]  }
  0x87   : > { %468 = vmatprep.subr.bf16.mxu0 %v1060_v13  ;;  %509 = vmatprep.subr.bf16.mxu1 %v1062_v14  ;;  %v358_v21 = vpack.c.bf16 %v357_v20, %v357_v20  ;;  %v347_v30 = vmul.f32 %v346_v29, %v345_v28  ;;  %s1158_s22 = sshll.u32 %s1253_s21, 4  ;;  %s1159_s22 = int_to_ptr.vmem [resolvable:$false] %s1158_s22 }
  0x88   : > { %p1156_p9 = pnand %p1155_p0, %p1598_p5  ;;  %s1160_s28 = scalar_lea.vmem %s1159_s22, 128 }
  0x89   : > { %v359_v22 = vunpack.c.l.bf16 %v358_v21  ;;  %v348_v34 = vand.u32 2147483647, %v347_v30  ;;  %p1161_p2 = scmp.lt.s32.totalorder %s1522_s4, %s1159_s22  ;;  %p1162_p7 = scmp.lt.s32.totalorder %s1160_s28, %s1154_s8 }
  0x8a   : > { %469 = vmatpush1.bf16.msra.mxu0 %v1064_v17  ;;  %510 = vmatpush1.bf16.msra.mxu1 %v1065_v18  ;;  %p1157_p1 = pneg %p1156_p9 }
  0x8b   : > { %547 = vmatprep.subr.bf16.mxu0 %v1042_v1  ;;  %588 = vmatprep.subr.bf16.mxu1 %v1044_v2  ;;  %v360_v23 = vsub.f32 %v357_v20, %v359_v22  ;;  %v350_v37 = vmul.f32 4.5, %v348_v34  ;;  %v913_v48 = vadd.f32 -0.055555556, %v348_v34  ;;  %vm349_vm2 = vcmp.lt.f32.partialorder %v348_v34, 0.11111111  ;;  %p1163_p4 = por %p1162_p7, %p1161_p2 }
  0x8d   : > { %v361_v24 = vpack.c.bf16 %v360_v23, %v360_v23  ;;  %v351_v47 = vmul.f32 %v350_v37, %v348_v34  ;;  %p1164_p8 = pnand %p1163_p4, %p1157_p1 }
  0x8f   : > { %930 = vmatmul.mubr.msk.bf16.vlgmr.msra.gmra.mrb[0].mxu0 %vm458_vm0, %v361_v24  ;;  %931 = vmatmul.mubr.msk.bf16.vlgmr.msra.gmra.mrb[0].mxu1 %vm458_vm0, %v361_v24  ;;  %v353_v54 = vsel %vm349_vm2, %v351_v47, %v913_v48 }
  0x90   : > { %548 = vmatpush1.bf16.msra.mxu0 %v1484_v3  ;;  %589 = vmatpush1.bf16.msra.mxu1 %v1486_v4 }
  0x91   : > { %549 = vmatprep.subr.bf16.mxu0 %v1048_v5  ;;  %590 = vmatprep.subr.bf16.mxu1 %v1050_v6 }
  0x92   : > { %579 = vmatprep.mubr.bf16.mxu0 %v1251_v0  ;;  %620 = vmatprep.mubr.bf16.mxu1 %v1251_v0 }
  0x94   : > { %550 = vmatpush1.bf16.msra.mxu0 %v1052_v7  ;;  %591 = vmatpush1.bf16.msra.mxu1 %v1053_v8 }
  0x95   : > { %551 = vmatprep.subr.bf16.mxu0 %v1054_v9  ;;  %592 = vmatprep.subr.bf16.mxu1 %v1056_v10 }
  0x98   : > { %552 = vmatpush1.bf16.msra.mxu0 %v1058_v11  ;;  %593 = vmatpush1.bf16.msra.mxu1 %v1059_v12 }
  0x99   : > { %553 = vmatprep.subr.bf16.mxu0 %v1060_v13  ;;  %594 = vmatprep.subr.bf16.mxu1 %v1062_v14 }
  0x9c   : > { %554 = vmatpush1.bf16.msra.mxu0 %v1064_v17  ;;  %595 = vmatpush1.bf16.msra.mxu1 %v1065_v18 }
  0x9d   : > { %632 = vmatprep.subr.bf16.mxu0 %v1042_v1  ;;  %673 = vmatprep.subr.bf16.mxu1 %v1044_v2 }
  0x9f   : > { %932 = vmatmul.mubr.msk.bf16.vlgmr.msra.gmra.mrb[0].mxu0 %vm458_vm0, %v358_v21  ;;  %933 = vmatmul.mubr.msk.bf16.vlgmr.msra.gmra.mrb[0].mxu1 %vm458_vm0, %v358_v21 }
  0xa0   : > { %633 = vmatpush1.bf16.msra.mxu0 %v1484_v3  ;;  %674 = vmatpush1.bf16.msra.mxu1 %v1486_v4 }
  0xa1   : > { %634 = vmatprep.subr.bf16.mxu0 %v1048_v5  ;;  %675 = vmatprep.subr.bf16.mxu1 %v1050_v6 }
  0xa2   : > { %664 = vmatprep.mubr.bf16.mxu0 %v1251_v0  ;;  %705 = vmatprep.mubr.bf16.mxu1 %v1251_v0 }
  0xa4   : > { %635 = vmatpush1.bf16.msra.mxu0 %v1052_v7  ;;  %676 = vmatpush1.bf16.msra.mxu1 %v1053_v8 }
  0xa5   : > { %636 = vmatprep.subr.bf16.mxu0 %v1054_v9  ;;  %677 = vmatprep.subr.bf16.mxu1 %v1056_v10 }
  0xa8   : > { %637 = vmatpush1.bf16.msra.mxu0 %v1058_v11  ;;  %678 = vmatpush1.bf16.msra.mxu1 %v1059_v12 }
  0xa9   : > { %638 = vmatprep.subr.bf16.mxu0 %v1060_v13  ;;  %679 = vmatprep.subr.bf16.mxu1 %v1062_v14 }
  0xac   : > { %639 = vmatpush1.bf16.msra.mxu0 %v1064_v17  ;;  %680 = vmatpush1.bf16.msra.mxu1 %v1065_v18 }
  0xaf   : > { %934 = vmatmul.mubr.msk.bf16.vlgmr.msra.gmra.mrb[0].mxu0 %vm458_vm0, %v355_v16  ;;  %935 = vmatmul.mubr.msk.bf16.vlgmr.msra.gmra.mrb[0].mxu1 %vm458_vm0, %v355_v16 }
 0x182   : > { %v666_v38 = vpop.f32.mrb[0].mxu0  ;;  %v707_v39 = vpop.f32.mrb[0].mxu1 }
 0x183   : > { %v668_v41 = vpop.f32.mrb[1].mxu0  ;;  %v709_v42 = vpop.f32.mrb[1].mxu1 }
 0x184   : > { %v718_v43 = vcombine.low %v666_v38, %v668_v41  ;;  %v719_v44 = vcombine.low %v707_v39, %v709_v42  ;;  %v670_v45 = vpop.f32.mrb[2].mxu0  ;;  %v711_v46 = vpop.f32.mrb[2].mxu1 }
 0x185   : > { %v671_v49 = vpop.f32.mrb[3].mxu0  ;;  %v712_v50 = vpop.f32.mrb[3].mxu1 }
 0x186   : > { %v726_v51 = vrot.slane %v718_v43, %v725_v40  ;;  %v733_v52 = vrot.slane %v719_v44, %v725_v40 }
 0x188   : > { %v734_v53 = vcombine.low %v726_v51, %v733_v52 }
 0x18a   : > { %v741_v55 = vrot.slane %v734_v53, %v725_v40 }
 0x18c   : > { %v743_v56 = vmul.f32 %v741_v55, %v353_v54 }
 0x18e   : > { %748 = vst.msk [vmem:[%s333_s12] sm:$0xf] %vm746_vm3, %v743_v56 }
 0x18f   : > { %1167 = shalt.err (!%p1164_p8)
}
 0x190   : > { %s1168_s15 = scalar_lea.hbm %s1520_s25, 64  ;;  %s1172_s26 = scalar_lea.hbm %s1574_s5, 128 }
 0x191   : > { %p1169_p11 = scmp.ne.s32.totalorder %s1520_s25, %s1168_s15  ;;  %p1173_p13 = scmp.lt.u32.totalorder %s1520_s25, %s1574_s5 }
 0x192   : > { %p1174_p3 = scmp.lt.u32.totalorder %s1172_s26, %s1168_s15  ;;  %p1176_p0 = scmp.lt.u32.totalorder %s1168_s15, %s1520_s25 }
 0x193   : > { %p1170_p6 = pnand %p1169_p11, %p1598_p5 }
 0x194   : > { %p1175_p12 = por %p1174_p3, %p1173_p13 }
 0x195   : > { %p1171_p10 = pneg %p1170_p6 }
 0x196   : > { %p1177_p9 = por %p1176_p0, %p1175_p12 }
 0x198   : > { %p1178_p1 = pnand %p1177_p9, %p1171_p10 }
 0x19a   : > { %1181 = shalt.err (!%p1178_p1)
}
 0x19b   : > { %968 = dma.vmem_to_hbm [thread:$0]  (%p1598_p5), %s1522_s4, 64, %s1520_s25, %s750_s17  }
 0x19c PF: > { %s778_s9 = sand.u32 1, %s1224_s18   ;;  %p1599_p2 = scmp.ne.s32.totalorder %s1584_s27, 0 }
 0x19d   : > { %p1600_p7 = scmp.ge.s32.totalorder %s1244_s23, 2  ;;  %s779_s30 = scalar_lea.sflag [#allocation4], %s778_s9 }
 0x19f   : > { %p982_p4 = pnand %p1600_p7, %p1599_p2 }
 0x1a1   : > { %1219 = dma.done.wait (!%p982_p4), %s779_s30, 64  }
 0x1a2   : > { %1221 = vsyncadd (!%p982_p4), %s779_s30, 4294967232  ;;  %s24_s23 = sadd.s32 1, %s1244_s23   ;;  %s1601_s6 = sld [smem:[#allocation15_spill]] }
 0x1a3   : > { %p21_p8 = scmp.ge.s32.totalorder %s24_s23, 4   ;;  %s1602_s21 = sld [smem:[#allocation13_spill]] }
 0x1a4   : > { %s1603_s22 = sld [smem:[#allocation14_spill]]  ;;  %s1604_s18 = smov %s1228_s19 }
 0x1a5   : > { %s1605_s19 = smov %s1232_s20  ;;  %23 = sbr.rel (!%p21_p8) target bundleno = 10 (0xa), region = 105 }
 0x1a8   : > { %s1606_s20 = smov %s1601_s6 }
 0x1ac   :  { %784 = vsyncpa [#allocation3], 1 }
 0x1ad   :  { %786 = vsyncpa [#allocation3 + $0x1], 1 }
 0x1ae   :  { %787 = vsyncpa [#allocation6], 1 }
 0x1af   :  { %789 = vsyncpa [#allocation6 + $0x1], 1 }
 0x1b0   :  { %790 = vsyncpa [#allocation4], 1 }
 0x1b1   :  { %792 = vsyncpa [#allocation4 + $0x1], 1 }

</bundles_post_ra>
